<compile_context>
chip_gen: v5e
topology: v5e:2x2
jax: 0.10.0
libtpu: 0.0.40
codegen_flags: <defaults>
</compile_context>

<pallas_src>
import functools

import jax
import jax.numpy as jnp
from jax.experimental import pallas as pl
from jax.experimental.pallas import tpu as pltpu

HIDDEN = 50        # logical hidden width of fc11/fc12
HID_PAD = 64       # zero-padded hidden width (exact for Linear + ReLU)
LANE = 128
MIB = 1 << 20


def _round_up(x, m):
    return (x + m - 1) // m * m


def _vmem_capacity_bytes():
    """Best-effort per-generation VMEM capacity (bytes)."""
    try:
        cap = int(pltpu.get_tpu_info().vmem_capacity_bytes)
        if cap > 0:
            return cap
    except Exception:
        pass
    try:
        kind = jax.devices()[0].device_kind.lower()
    except Exception:
        kind = ""
    if "v7" in kind:
        return 64 * MIB
    if any(t in kind for t in ("v4", "v5", "v6")):
        return 128 * MIB
    return 64 * MIB            # conservative default


def _clamp_vmem(need, cap):
    return int(min(max(need, 32 * MIB), max(cap - 4 * MIB, 32 * MIB)))


# ----------------------- fused path (size_pad <= MAX_TILE) -----------------------
def _fused_kernel(x_ref, w1_ref, b1_ref, w2_ref, b2_ref, w3_ref, b3_ref, out_ref):
    h1 = jnp.maximum(
        jnp.dot(x_ref[...], w1_ref[...], preferred_element_type=jnp.float32)
        + b1_ref[...], 0.0)
    h2 = jnp.maximum(
        jnp.dot(h1.astype(jnp.bfloat16), w2_ref[...],
                preferred_element_type=jnp.float32) + b2_ref[...], 0.0)
    out_ref[...] = jnp.dot(h2.astype(jnp.bfloat16), w3_ref[...],
                           preferred_element_type=jnp.float32) + b3_ref[...]


@functools.partial(jax.jit, static_argnames=("size", "vmem_limit"))
def _fused_forward(x_pad, w1, b1, w2, b2, w3, b3, *, size, vmem_limit):
    size_pad = x_pad.shape[1]
    cost = pl.CostEstimate(
        flops=int(4 * size_pad * HID_PAD + 2 * HID_PAD * HID_PAD),
        transcendentals=0,
        bytes_accessed=int(size_pad * 2 + 2 * size_pad * HID_PAD * 2
                           + HID_PAD * HID_PAD * 2 + 2 * size_pad * 4),
    )
    out_pad = pl.pallas_call(
        _fused_kernel,
        out_shape=jax.ShapeDtypeStruct((1, size_pad), jnp.float32),
        compiler_params=pltpu.CompilerParams(vmem_limit_bytes=vmem_limit),
        cost_estimate=cost,
    )(x_pad, w1, b1, w2, b2, w3, b3)
    return out_pad[:, :size]


# ------------------------ streamed path (large size_pad) ------------------------
def _partial_kernel(x_ref, w1_ref, part_ref, acc_ref):
    """Partial sums of x @ W1 over one K-split (leading grid axis is parallel)."""
    k = pl.program_id(1)

    @pl.when(k == 0)
    def _():
        acc_ref[...] = jnp.zeros_like(acc_ref)

    acc_ref[...] += jnp.dot(x_ref[...], w1_ref[...],
                            preferred_element_type=jnp.float32)

    @pl.when(k == pl.num_programs(1) - 1)
    def _():
        # Broadcast over 8 sublanes so the output block is natively tiled.
        part_ref[...] = jnp.broadcast_to(acc_ref[...], (8, HID_PAD))


def _expand_kernel(h2_ref, w3_ref, b3_ref, out_ref):
    out_ref[...] = jnp.dot(h2_ref[...], w3_ref[...],
                           preferred_element_type=jnp.float32) + b3_ref[...]


@functools.partial(jax.jit, static_argnames=("size", "tile", "nsplit",
                                             "vmem_limit1", "vmem_limit2"))
def _streamed_forward(x_pad, w1, b1, w2, b2, w3, b3, *, size, tile, nsplit,
                      vmem_limit1, vmem_limit2):
    size_pad = x_pad.shape[1]
    nt = size_pad // tile
    nt_in = nt // nsplit

    cost1 = pl.CostEstimate(
        flops=int(2 * size_pad * HID_PAD),
        transcendentals=0,
        bytes_accessed=int(size_pad * 2 + size_pad * HID_PAD * 2
                           + nsplit * 8 * HID_PAD * 4),
    )
    partial = pl.pallas_call(
        _partial_kernel,
        out_shape=jax.ShapeDtypeStruct((8 * nsplit, HID_PAD), jnp.float32),
        grid=(nsplit, nt_in),
        in_specs=[
            pl.BlockSpec((1, tile), lambda c, k: (0, c * nt_in + k)),        # x slice
            pl.BlockSpec((tile, HID_PAD), lambda c, k: (c * nt_in + k, 0)),  # W1 slab
        ],
        out_specs=pl.BlockSpec((8, HID_PAD), lambda c, k: (c, 0)),
        scratch_shapes=[pltpu.VMEM((1, HID_PAD), jnp.float32)],
        compiler_params=pltpu.CompilerParams(
            dimension_semantics=("parallel", "arbitrary"),
            vmem_limit_bytes=vmem_limit1),
        cost_estimate=cost1,
    )(x_pad, w1)

    # Tiny combine + fc11 bias/ReLU + fc12 epilogue on (1, 64) tensors.
    part = partial.reshape(nsplit, 8, HID_PAD)[:, 0, :]
    h1 = jnp.maximum(jnp.sum(part, axis=0, keepdims=True) + b1, 0.0)
    h2 = jnp.maximum(
        jnp.dot(h1.astype(jnp.bfloat16), w2,
                preferred_element_type=jnp.float32) + b2, 0.0)
    h2 = h2.astype(jnp.bfloat16)

    cost2 = pl.CostEstimate(
        flops=int(2 * HID_PAD * size_pad),
        transcendentals=0,
        bytes_accessed=int(HID_PAD * 2 + HID_PAD * size_pad * 2
                           + 2 * size_pad * 4),
    )
    out_pad = pl.pallas_call(
        _expand_kernel,
        out_shape=jax.ShapeDtypeStruct((1, size_pad), jnp.float32),
        grid=(nt,),
        in_specs=[
            pl.BlockSpec((1, HID_PAD), lambda j: (0, 0)),        # h2 (resident, bf16)
            pl.BlockSpec((HID_PAD, tile), lambda j: (0, j)),     # W3 slab (bf16)
            pl.BlockSpec((1, tile), lambda j: (0, j)),           # b3 slice
        ],
        out_specs=pl.BlockSpec((1, tile), lambda j: (0, j)),     # lane-dense out
        compiler_params=pltpu.CompilerParams(
            dimension_semantics=("parallel",),
            vmem_limit_bytes=vmem_limit2),
        cost_estimate=cost2,
    )(h2, w3, b3)

    return out_pad[:, :size]


# ----------------------------------- wrapper -----------------------------------
class MetaNetPallas:
    """JAX/Pallas re-implementation of Meta_net(mask)."""

    def __init__(self, mask_shape, key, _force_tile=None):
        self.mask_shape = tuple(mask_shape)
        size = 1
        for d in self.mask_shape:
            size *= int(d)
        self.size = size

        vmem_cap = _vmem_capacity_bytes()
        # Per-generation streaming tile (also the fused-path size cap):
        # 64 MiB VMEM (v7x) -> 32768; 128 MiB (v5e/v6e) -> 65536.
        max_tile = 65536 if vmem_cap >= 100 * MIB else 32768
        tile = _force_tile if _force_tile is not None else min(
            max_tile, _round_up(size, LANE))
        self.tile = tile
        self.size_pad = _round_up(size, tile)
        nt = self.size_pad // tile
        self.streamed = nt >= 2
        # 2-way K split so v7x's two TensorCores stream disjoint halves of W1.
        self.nsplit = 2 if (self.streamed and nt % 2 == 0) else 1

        # VMEM budgets (lane-padded, double-buffered streaming blocks).
        self.vlim_fused = _clamp_vmem(
            8 * self.size_pad * 2                 # x (bf16, 8 sublanes)
            + self.size_pad * LANE * 2            # W1 (64 lanes pad to 128)
            + HID_PAD * LANE * 2                  # W2
            + HID_PAD * self.size_pad * 2         # W3
            + 2 * 8 * self.size_pad * 4           # b3 + out (f32)
            + 4 * MIB, vmem_cap)
        self.vlim1 = _clamp_vmem(544 * tile + 4 * MIB, vmem_cap)   # 2*(x + W1) blocks
        self.vlim2 = _clamp_vmem(384 * tile + 4 * MIB, vmem_cap)   # 2*(W3 + b3 + out)

        # nn.init.kaiming_uniform_(w) (a=0, fan_in, leaky_relu) -> bound=sqrt(6/fan_in);
        # biases are set to 0.
        def kaiming_uniform(k, fan_in, shape):
            bound = jnp.sqrt(6.0 / fan_in)
            return jax.random.uniform(k, shape, jnp.float32, -bound, bound)

        k1, k2, k3 = jax.random.split(key, 3)
        # PyTorch Linear weight is (out, in); build as (in, out) directly.
        w1 = kaiming_uniform(k1, size, (size, HIDDEN))
        w2 = kaiming_uniform(k2, HIDDEN, (HIDDEN, HIDDEN))
        w3 = kaiming_uniform(k3, HIDDEN, (HIDDEN, size))

        sp, hp = self.size_pad, HID_PAD
        # Zero padding is exact for Linear + ReLU; weights stream as bf16.
        self.w1 = jnp.pad(w1, ((0, sp - size), (0, hp - HIDDEN))).astype(jnp.bfloat16)
        self.w2 = jnp.pad(w2, ((0, hp - HIDDEN), (0, hp - HIDDEN))).astype(jnp.bfloat16)
        self.w3 = jnp.pad(w3, ((0, hp - HIDDEN), (0, sp - size))).astype(jnp.bfloat16)
        self.b1 = jnp.zeros((1, hp), jnp.float32)
        self.b2 = jnp.zeros((1, hp), jnp.float32)
        self.b3 = jnp.zeros((1, sp), jnp.float32)

    def _prep_input(self, x):
        x_flat = x.reshape(1, self.size).astype(jnp.float32)
        x_pad = jnp.pad(x_flat, ((0, 0), (0, self.size_pad - self.size)))
        return x_pad.astype(jnp.bfloat16)            # pre-cast: half the x DMA

    def __call__(self, x):
        assert x.shape == self.mask_shape
        x_pad = self._prep_input(x)
        if self.streamed:
            out_flat = _streamed_forward(
                x_pad, self.w1, self.b1, self.w2, self.b2, self.w3, self.b3,
                size=self.size, tile=self.tile, nsplit=self.nsplit,
                vmem_limit1=self.vlim1, vmem_limit2=self.vlim2)
        else:
            out_flat = _fused_forward(
                x_pad, self.w1, self.b1, self.w2, self.b2, self.w3, self.b3,
                size=self.size, vmem_limit=self.vlim_fused)
        return out_flat.reshape(self.mask_shape)

    def reference(self, x):
        """Pure-JAX reference with the same bf16 weight/activation numerics."""
        x_pad = self._prep_input(x)
        h1 = jnp.maximum(
            jnp.dot(x_pad, self.w1, preferred_element_type=jnp.float32) + self.b1, 0.0)
        h2 = jnp.maximum(
            jnp.dot(h1.astype(jnp.bfloat16), self.w2,
                    preferred_element_type=jnp.float32) + self.b2, 0.0)
        out = jnp.dot(h2.astype(jnp.bfloat16), self.w3,
                      preferred_element_type=jnp.float32) + self.b3
        return out[:, :self.size].reshape(self.mask_shape)


if __name__ == "__main__":
    key = jax.random.PRNGKey(0)
    k1, k2, k3, k4 = jax.random.split(key, 4)

    # Small mask shaped like a conv weight [out_ch=4, in_ch=4, kH=3, kW=3]:
    # size=144 -> exercises the fused single-kernel path.
    mask_shape = (4, 4, 3, 3)
    model = MetaNetPallas(mask_shape, k1)
    x = jax.random.normal(k2, mask_shape, dtype=jnp.float32)
    out = jax.block_until_ready(model(x))
    ref = model.reference(x)
    assert out.shape == mask_shape
    assert jnp.allclose(out, ref, atol=5e-3, rtol=5e-3), "fused path mismatch"

    # Slightly larger mask with a forced small tile: exercises the streamed
    # split-K phase-1 + lane-dense phase-2 path at tiny cost.
    mask_shape2 = (8, 8, 4, 4)          # size = 1024
    model2 = MetaNetPallas(mask_shape2, k3, _force_tile=256)
    assert model2.streamed and model2.nsplit == 2
    x2 = jax.random.normal(k4, mask_shape2, dtype=jnp.float32)
    out2 = jax.block_until_ready(model2(x2))
    ref2 = model2.reference(x2)
    assert out2.shape == mask_shape2
    assert jnp.allclose(out2, ref2, atol=5e-3, rtol=5e-3), "streamed path mismatch"

    print("KERNEL_OK")
</pallas_src>

<mosaic_0001>
module attributes {stable_mosaic.version = 11 : i64} {
  func.func @_fused_kernel(%arg0: memref<1x256xbf16, #tpu.memory_space<vmem>>, %arg1: memref<256x64xbf16, #tpu.memory_space<vmem>>, %arg2: memref<1x64xf32, #tpu.memory_space<vmem>>, %arg3: memref<64x64xbf16, #tpu.memory_space<vmem>>, %arg4: memref<1x64xf32, #tpu.memory_space<vmem>>, %arg5: memref<64x256xbf16, #tpu.memory_space<vmem>>, %arg6: memref<1x256xf32, #tpu.memory_space<vmem>>, %arg7: memref<1x256xf32, #tpu.memory_space<vmem>>) attributes {dimension_semantics = [], scalar_prefetch = 0 : i64, scratch_operands = 0 : i64, tpu.core_type = #tpu.core_type<tc>} {
    %c0 = arith.constant 0 : index
    %c0_0 = arith.constant 0 : index
    %0 = vector.load %arg0[%c0, %c0_0] : memref<1x256xbf16, #tpu.memory_space<vmem>>, vector<1x256xbf16>
    %c0_1 = arith.constant 0 : index
    %c0_2 = arith.constant 0 : index
    %1 = vector.load %arg1[%c0_1, %c0_2] : memref<256x64xbf16, #tpu.memory_space<vmem>>, vector<256x64xbf16>
    %cst = arith.constant dense<0.000000e+00> : vector<1x64xf32>
    %2 = tpu.matmul %0, %1, %cst {dimension_numbers = #tpu.dot_dimension_numbers<[1], [0], [0], [1], [0, 0, 1, 1], [], []>} : vector<1x256xbf16>, vector<256x64xbf16>, vector<1x64xf32> -> vector<1x64xf32>
    %c0_3 = arith.constant 0 : index
    %c0_4 = arith.constant 0 : index
    %3 = vector.load %arg2[%c0_3, %c0_4] : memref<1x64xf32, #tpu.memory_space<vmem>>, vector<1x64xf32>
    %4 = arith.addf %2, %3 : vector<1x64xf32>
    %cst_5 = arith.constant 0.000000e+00 : f32
    %5 = vector.broadcast %cst_5 : f32 to vector<1x64xf32>
    %6 = arith.maximumf %4, %5 : vector<1x64xf32>
    %7 = arith.truncf %6 : vector<1x64xf32> to vector<1x64xbf16>
    %c0_6 = arith.constant 0 : index
    %c0_7 = arith.constant 0 : index
    %8 = vector.load %arg3[%c0_6, %c0_7] : memref<64x64xbf16, #tpu.memory_space<vmem>>, vector<64x64xbf16>
    %cst_8 = arith.constant dense<0.000000e+00> : vector<1x64xf32>
    %9 = tpu.matmul %7, %8, %cst_8 {dimension_numbers = #tpu.dot_dimension_numbers<[1], [0], [0], [1], [0, 0, 1, 1], [], []>} : vector<1x64xbf16>, vector<64x64xbf16>, vector<1x64xf32> -> vector<1x64xf32>
    %c0_9 = arith.constant 0 : index
    %c0_10 = arith.constant 0 : index
    %10 = vector.load %arg4[%c0_9, %c0_10] : memref<1x64xf32, #tpu.memory_space<vmem>>, vector<1x64xf32>
    %11 = arith.addf %9, %10 : vector<1x64xf32>
    %cst_11 = arith.constant 0.000000e+00 : f32
    %12 = vector.broadcast %cst_11 : f32 to vector<1x64xf32>
    %13 = arith.maximumf %11, %12 : vector<1x64xf32>
    %14 = arith.truncf %13 : vector<1x64xf32> to vector<1x64xbf16>
    %c0_12 = arith.constant 0 : index
    %c0_13 = arith.constant 0 : index
    %15 = vector.load %arg5[%c0_12, %c0_13] : memref<64x256xbf16, #tpu.memory_space<vmem>>, vector<64x256xbf16>
    %cst_14 = arith.constant dense<0.000000e+00> : vector<1x256xf32>
    %16 = tpu.matmul %14, %15, %cst_14 {dimension_numbers = #tpu.dot_dimension_numbers<[1], [0], [0], [1], [0, 0, 1, 1], [], []>} : vector<1x64xbf16>, vector<64x256xbf16>, vector<1x256xf32> -> vector<1x256xf32>
    %c0_15 = arith.constant 0 : index
    %c0_16 = arith.constant 0 : index
    %17 = vector.load %arg6[%c0_15, %c0_16] : memref<1x256xf32, #tpu.memory_space<vmem>>, vector<1x256xf32>
    %18 = arith.addf %16, %17 : vector<1x256xf32>
    %c0_17 = arith.constant 0 : index
    %c0_18 = arith.constant 0 : index
    %19 = vector.load %arg7[%c0_17, %c0_18] : memref<1x256xf32, #tpu.memory_space<vmem>>, vector<1x256xf32>
    tpu.vector_store %arg7[%c0_17, %c0_18], %18 {strides = array<i32>} : memref<1x256xf32, #tpu.memory_space<vmem>>, vector<1x256xf32>,
    return
  }
}

</mosaic_0001>

<bundles_post_ra>
// kernel: _fused_forward.1
= control target key start
LH: loop header
LB: loop body
LE: loop exit
PB: predicated region body
PF: predicated region fallthrough
CT: control target
= control target key end

     0   :  { %s691_s0 = inlined_call_operand.vmem [shape: bf16[1,256], index: 0, kind: input, shape index: {}]   ;;  %s692_s1 = inlined_call_operand.vmem [shape: bf16[256,64], index: 1, kind: input, shape index: {}]   ;;  %s693_s2 = inlined_call_operand.vmem [shape: f32[1,64], index: 2, kind: input, shape index: {}]   ;;  %s694_s3 = inlined_call_operand.vmem [shape: bf16[64,64], index: 3, kind: input, shape index: {}]   ;;  %s695_s4 = inlined_call_operand.vmem [shape: f32[1,64], index: 4, kind: input, shape index: {}]   ;;  %s696_s5 = inlined_call_operand.vmem [shape: bf16[64,256], index: 5, kind: input, shape index: {}]   ;;  %s697_s6 = inlined_call_operand.vmem [shape: f32[1,256], index: 6, kind: input, shape index: {}]   ;;  %s698_s7 = inlined_call_operand.hbm [shape: f32[1,256], index: 7, kind: output, shape index: {}]  }
   0x1   :  { %v476_v0 = vld [vmem:[%s692_s1 + $0x38] sm:$0xff]  ;;  %v475_v2 = vld [vmem:[%s692_s1 + $0x30] sm:$0xff]  ;;  %v28_v4 = vld [vmem:[%s691_s0] sm:$0x3] }
   0x2   :  { %v484_v1 = vld [vmem:[%s692_s1 + $0x78] sm:$0xff]  ;;  %164 = vmatpush.bf16.msra.mxu0 %v476_v0  ;;  %v483_v3 = vld [vmem:[%s692_s1 + $0x70] sm:$0xff]  ;;  %v474_v6 = vld [vmem:[%s692_s1 + $0x28] sm:$0xff]  ;;  %63 = vst [vmem:[#allocation1] ss:$9 sm:$0xff] %v28_v4 }
   0x3   :  { %177 = vmatpush.bf16.msra.mxu1 %v484_v1  ;;  %v488_v5 = vld [vmem:[%s694_s3 + $0x18] sm:$0xff]  ;;  %v482_v7 = vld [vmem:[%s692_s1 + $0x68] sm:$0xff]  ;;  %v487_v8 = vld [vmem:[%s694_s3 + $0x10] sm:$0xff] }
   0x4   :  { %233 = vmatpush.bf16.msra.mxu2 %v488_v5 }
   0x6   :  { %165 = vmatpush.bf16.msra.mxu0 %v475_v2 }
   0x7   :  { %178 = vmatpush.bf16.msra.mxu1 %v483_v3 }
   0x8   :  { %12 = vsyncpa [#allocation3], 0  ;;  %v473_v9 = vld [vmem:[%s692_s1 + $0x20] sm:$0xff]  ;;  %234 = vmatpush.bf16.msra.mxu2 %v487_v8  ;;  %v472_v11 = vld [vmem:[%s692_s1 + $0x18] sm:$0xff]  ;;  %vm225_vm0 = vcmask 523264   ;;  %v333_v1 = vlaneseq  ;;  %s345_s29 = sshll.u32 %s698_s7, 4  ;;  %s346_s29 = int_to_ptr.hbm [resolvable:$true] %s345_s29 }
   0x9   :  { %v481_v10 = vld [vmem:[%s692_s1 + $0x60] sm:$0xff]  ;;  %v480_v12 = vld [vmem:[%s692_s1 + $0x58] sm:$0xff]  ;;  %v471_v13 = vld [vmem:[%s692_s1 + $0x10] sm:$0xff]  ;;  %vm330_vm1 = vcmask 1040384  }
   0xa   :  { %166 = vmatpush.bf16.msra.mxu0 %v474_v6  ;;  %v479_v14 = vld [vmem:[%s692_s1 + $0x50] sm:$0xff]  ;;  %v470_v15 = vld [vmem:[%s692_s1 + $0x8] sm:$0xff]  ;;  %v469_v17 = vld [vmem:[%s692_s1] sm:$0xff]  ;;  %vm335_vm2 = vcmp.lt.s32.totalorder %v333_v1, 256 }
   0xb   :  { %179 = vmatpush.bf16.msra.mxu1 %v482_v7  ;;  %v478_v16 = vld [vmem:[%s692_s1 + $0x48] sm:$0xff]  ;;  %v477_v18 = vld [vmem:[%s692_s1 + $0x40] sm:$0xff]  ;;  %v495_v23 = vld [vmem:[%s696_s5 + $0x34] sm:$0xf] }
   0xc   :  { %v64_v19 = vld [vmem:[#allocation1] sm:$0xff]  ;;  %v65_v20 = vld [vmem:[#allocation1 + $0x9] sm:$0xff]  ;;  %v463_v24 = vld [vmem:[%s696_s5 + $0x38] sm:$0xf0] }
   0xd   :  { %v486_v21 = vld [vmem:[%s694_s3 + $0x8] sm:$0xff]  ;;  %v485_v22 = vld [vmem:[%s694_s3] sm:$0xff]  ;;  %v461_v25 = vld [vmem:[%s696_s5 + $0x30] sm:$0xf]  ;;  %v466_v26 = vor.u32 %v495_v23, %v463_v24 }
   0xe   :  { %167 = vmatpush.bf16.msra.mxu0 %v473_v9  ;;  %235 = vmatpush.bf16.msra.mxu2 %v486_v21  ;;  %v496_v27 = vld [vmem:[%s696_s5 + $0x34] sm:$0xf0]  ;;  %v493_v28 = vld [vmem:[%s696_s5 + $0x24] sm:$0xf]  ;;  %v455_v29 = vld [vmem:[%s696_s5 + $0x28] sm:$0xf0] }
   0xf   :  { %180 = vmatpush.bf16.msra.mxu1 %v481_v10  ;;  %v462_v30 = vor.u32 %v496_v27, %v461_v25  ;;  %v453_v31 = vld [vmem:[%s696_s5 + $0x20] sm:$0xf]  ;;  %v494_v32 = vld [vmem:[%s696_s5 + $0x24] sm:$0xf0]  ;;  %v458_v33 = vor.u32 %v493_v28, %v455_v29  ;;  %v491_v35 = vld [vmem:[%s696_s5 + $0x14] sm:$0xf] }
  0x10   :  { %v454_v34 = vor.u32 %v494_v32, %v453_v31  ;;  %v447_v36 = vld [vmem:[%s696_s5 + $0x18] sm:$0xf0]  ;;  %v61_v38 = vld [vmem:[%s693_s2] sm:$0x1]  ;;  %v445_v47 = vld [vmem:[%s696_s5 + $0x10] sm:$0xf] }
  0x11   :  { %305 = vmatpush.bf16.msra.mxu3 %v462_v30  ;;  %v450_v37 = vor.u32 %v491_v35, %v447_v36  ;;  %v492_v48 = vld [vmem:[%s696_s5 + $0x14] sm:$0xf0]  ;;  %v489_v50 = vld [vmem:[%s696_s5 + $0x4] sm:$0xf]  ;;  %v439_v51 = vld [vmem:[%s696_s5 + $0x8] sm:$0xf0] }
  0x12   :  { %168 = vmatpush.bf16.msra.mxu0 %v472_v11  ;;  %236 = vmatpush.bf16.msra.mxu2 %v485_v22  ;;  %v446_v49 = vor.u32 %v492_v48, %v445_v47  ;;  %v437_v52 = vld [vmem:[%s696_s5] sm:$0xf]  ;;  %v442_v53 = vor.u32 %v489_v50, %v439_v51  ;;  %v490_v54 = vld [vmem:[%s696_s5 + $0x4] sm:$0xf0] }
  0x13   :  { %181 = vmatpush.bf16.msra.mxu1 %v480_v12  ;;  %v438_v55 = vor.u32 %v490_v54, %v437_v52  ;;  %v200_v56 = vld [vmem:[%s695_s4] sm:$0x1]  ;;  %s524_s4 = smov [#allocation2]  }
  0x14   :  { %v252_v62 = vld [vmem:[%s697_s6] sm:$0x3]  ;;  %s343_s5 = sshll.u32 %s524_s4, 4  ;;  %s344_s5 = int_to_ptr.vmem [resolvable:$true] %s343_s5 }
  0x15   :  { %306 = vmatpush.bf16.msra.mxu3 %v454_v34  ;;  %v295_v63 = vperm.slane %v252_v62, 1  ;;  %v294_v0 = vperm.slane %v252_v62, 0 }
  0x16   :  { %169 = vmatpush.bf16.msra.mxu0 %v471_v13  ;;  %318 = vmatpush.bf16.msrb.mxu2 %v466_v26 }
  0x17   :  { %182 = vmatpush.bf16.msra.mxu1 %v479_v14 }
  0x19   :  { %307 = vmatpush.bf16.msra.mxu3 %v446_v49 }
  0x1a   :  { %170 = vmatpush.bf16.msra.mxu0 %v470_v15  ;;  %319 = vmatpush.bf16.msrb.mxu2 %v458_v33 }
  0x1b   :  { %183 = vmatpush.bf16.msra.mxu1 %v478_v16 }
  0x1d   :  { %308 = vmatpush.bf16.msra.mxu3 %v438_v55 }
  0x1e   :  { %171 = vmatpush.bf16.msra.mxu0 %v469_v17  ;;  %320 = vmatpush.bf16.msrb.mxu2 %v450_v37 }
  0x1f   :  { %184 = vmatpush.bf16.msra.mxu1 %v477_v18 }
  0x21   :  { %172 = vmatmul.bf16.vlgmr.msra.gmra.mxu0 %v64_v19 }
  0x22   :  { %185 = vmatmul.bf16.vlgmr.msra.gmra.mxu1 %v65_v20  ;;  %321 = vmatpush.bf16.msrb.mxu2 %v442_v53 }
  0x9e   :  { %v173_v39 = vpop.f32.mrf.mxu0 }
  0x9f   :  { %v186_v40 = vpop.f32.mrf.mxu1  ;;  %v174_v41 = vadd.f32 %v173_v39, %v61_v38 }
  0xa1   :  { %v187_v42 = vadd.f32 %v186_v40, %v174_v41 }
  0xa3   :  { %v190_v43 = vmax.f32 %v187_v42, 0.0 }
  0xa5   :  { %v191_v44 = vpack.c.bf16 %v190_v43, %v190_v43 }
  0xa6   :  { %v175_v45 = vpop.f32.mrf.mxu0 }
  0xa7   :  { %v188_v46 = vpop.f32.mrf.mxu1  ;;  %434 = vmatmul.msk.bf16.vlgmr.msra.gmra.mxu2 %vm225_vm0, %v191_v44 }
 0x12a   :  { %v238_v57 = vpop.f32.mrf.mxu2 }
 0x12b   :  { %v239_v58 = vadd.f32 %v238_v57, %v200_v56 }
 0x12d   :  { %v242_v59 = vmax.f32 %v239_v58, 0.0 }
 0x12f   :  { %v243_v60 = vpack.c.bf16 %v242_v59, %v242_v59 }
 0x131   :  { %467 = vmatmul.msk.bf16.vlgmr.msra.gmra.mxu3 %vm225_vm0, %v243_v60  ;;  %468 = vmatmul.msk.bf16.vlgmr.msrb.gmra.mxu2 %vm225_vm0, %v243_v60 }
 0x132   :  { %v240_v61 = vpop.f32.mrf.mxu2 }
 0x1b4   :  { %v310_v2 = vpop.f32.mrf.mxu3  ;;  %v323_v3 = vpop.f32.mrf.mxu2 }
 0x1b5   :  { %v324_v4 = vadd.f32 %v323_v3, %v295_v63  ;;  %v311_v5 = vadd.f32 %v310_v2, %v294_v0 }
 0x1b7   :  { %v329_v6 = vrot.slane %v324_v4, 7 }
 0x1b9   :  { %v331_v7 = vsel %vm330_vm1, %v311_v5, %v329_v6 }
 0x1ba   :  { %337 = vst.msk [vmem:[#allocation2] sm:$0x3] %vm335_vm2, %v331_v7 }
 0x1bb   :  { %348 = dma.vmem_to_hbm [thread:$0]  %s344_s5, 32, %s346_s29, [#allocation3]  }
 0x1bc   :  { %v312_v8 = vpop.f32.mrf.mxu3  ;;  %v325_v9 = vpop.f32.mrf.mxu2 }
 0x1bd   :  { %522 = dma.done.wait [#allocation3], 32  }
 0x1be   :  { %523 = vsyncadd [#allocation3], 4294967264 }
 0x1bf   :  { %353 = vsyncpa [#allocation3], 1 }

</bundles_post_ra>
